<compile_context>
chip_gen: v5e
topology: v5e:2x2
jax: 0.10.0
libtpu: 0.0.40
codegen_flags: <defaults>
</compile_context>

<pallas_src>
import jax
import jax.numpy as jnp
from jax.experimental import pallas as pl
from jax.experimental.pallas import tpu as pltpu


def _round_up(x, m):
    return ((x + m - 1) // m) * m


def _pick_col_tile(e_pad, cap=1024):
    """Largest multiple of 128 that divides e_pad and is <= cap.

    Divisor-aware so E is never re-padded beyond the 128-lane MXU alignment
    (avoids wasted W DMA / MXU work / output stores for odd embed dims)."""
    n = e_pad // 128
    best = 128
    for d in range(1, n + 1):
        if n % d == 0 and 128 * d <= cap:
            best = 128 * d
    return best


def _pick_row_tile(m, cap=1024):
    """Row tile: multiple of 16 (bf16 sublane packing), <= cap.

    Prefers a tile that divides m exactly (no padding -> no post-kernel slice copy) and
    leaves >= 2 grid steps so both of v7x's TensorCores get work; falls back to a padded
    tile (split once when it would otherwise be a single grid step)."""
    upper = max(16, min(cap, _round_up(m, 16)))
    for tm in range(upper, 15, -16):
        if m % tm == 0 and (m // tm >= 2 or tm <= 16):
            return tm
    if upper >= m and upper > 16:
        # No clean divisor and a single padded tile would cover everything:
        # split once so the v7x megacore still gets two row tiles.
        return _round_up((m + 1) // 2, 16)
    return upper


def _patch_embed_kernel(x_ref, w_ref, b_ref, o_ref):
    # (TM, K) @ (K, TE) on the MXU with f32 accumulation; bias add + cast on the VPU.
    acc = jnp.dot(x_ref[...], w_ref[...], preferred_element_type=jnp.float32)
    o_ref[...] = (acc + b_ref[...]).astype(o_ref.dtype)


def patch_embedding_forward(im, weight, bias, patch_size, out_dtype=jnp.bfloat16):
    """im: (B, C, H, W) NCHW; weight: (E, C, P, P); bias: (E,). Returns (B, N, E).

    Note: operands are cast to bf16 (f32 accumulation in the MXU) and the output is
    bf16 by default — an intentional precision trade vs. the f32 PyTorch Conv2d.
    Pass out_dtype=jnp.float32 to keep the module's output dtype."""
    B, C, H, W = im.shape
    E = weight.shape[0]
    P = patch_size
    assert H % P == 0 and W % P == 0, "image dimensions must be divisible by the patch size"
    Hg, Wg = H // P, W // P
    N = Hg * Wg
    K = C * P * P
    M = B * N
    out_itemsize = jnp.dtype(out_dtype).itemsize

    # --- glue: im2col in bf16 (cast is fused into this single transpose pass by XLA) ---
    # TODO(synk): fuse this patch extraction into the kernel so the (M, K) bf16
    # intermediate never round-trips HBM (see header note).
    xp = im.astype(jnp.bfloat16).reshape(B, C, Hg, P, Wg, P)
    xp = xp.transpose(0, 2, 4, 1, 3, 5).reshape(M, K)      # (C, ph, pw) flatten == Conv2d layout
    w2d = weight.astype(jnp.bfloat16).reshape(E, K).T      # (K, E)
    b2d = bias.astype(jnp.float32).reshape(1, E)           # bias stays f32 for the epilogue add

    # --- pad / tile so every block is MXU- and lane-aligned ---
    K_pad = _round_up(K, 128)                 # contraction dim: lanes of X / sublanes of W
    E_pad = _round_up(E, 128)                 # lane-dense output -> unmasked stores
    TE = _pick_col_tile(E_pad, cap=1024)      # un-tiled for E_pad <= 1024 (ViT-S/B/L, demo)

    # Row-tile cap: 1024, further reduced so double-buffered X/out tiles plus the
    # (double-buffered) resident W/bias stay under ~24 MiB of scoped VMEM.
    vmem_budget = 24 * 1024 * 1024
    w_bytes = 2 * K_pad * TE * 2 + 2 * TE * 4
    bytes_per_row = 2 * K_pad * 2 + 2 * TE * out_itemsize
    row_cap = max(16, ((vmem_budget - w_bytes) // bytes_per_row) // 16 * 16)
    TM = _pick_row_tile(M, cap=min(1024, row_cap))

    M_pad = _round_up(M, TM)
    if (M_pad, K_pad) != (M, K):
        xp = jnp.pad(xp, ((0, M_pad - M), (0, K_pad - K)))
    if (K_pad, E_pad) != (K, E):
        w2d = jnp.pad(w2d, ((0, K_pad - K), (0, E_pad - E)))
    if E_pad != E:
        b2d = jnp.pad(b2d, ((0, 0), (0, E_pad - E)))

    grid_e = E_pad // TE
    grid_m = M_pad // TM
    # E tiles on the OUTER (slow) axis, M tiles on the INNER (fast) axis: the W / bias
    # block index only changes with the outer axis, so they are fetched once per E tile
    # and stay resident in VMEM across the whole inner row loop.
    grid = (grid_e, grid_m)

    cost = pl.CostEstimate(
        flops=2 * M_pad * K_pad * E_pad,
        transcendentals=0,
        bytes_accessed=(grid_e * M_pad * K_pad * 2        # X (bf16), re-read once per E tile
                        + K_pad * E_pad * 2               # W (bf16), once per E tile
                        + E_pad * 4                       # bias (f32)
                        + M_pad * E_pad * out_itemsize),  # output
    )

    out2d = pl.pallas_call(
        _patch_embed_kernel,
        out_shape=jax.ShapeDtypeStruct((M_pad, E_pad), out_dtype),
        grid_spec=pltpu.PrefetchScalarGridSpec(
            num_scalar_prefetch=0,
            grid=grid,
            in_specs=[
                pl.BlockSpec((TM, K_pad), lambda j, i: (i, 0)),   # X: tiled over rows, K whole
                pl.BlockSpec((K_pad, TE), lambda j, i: (0, j)),   # W: resident across inner rows
                pl.BlockSpec((1, TE), lambda j, i: (0, j)),       # bias: resident across inner rows
            ],
            out_specs=pl.BlockSpec((TM, TE), lambda j, i: (i, j)),
        ),
        compiler_params=pltpu.CompilerParams(
            dimension_semantics=("parallel", "parallel"),
        ),
        cost_estimate=cost,
    )(xp, w2d, b2d)

    if (M_pad, E_pad) != (M, E):   # only pay the slice copy when padding was unavoidable
        out2d = out2d[:M, :E]
    return out2d.reshape(B, N, E)


if __name__ == "__main__":
    # Small shapes consistent with the module: image 16x16, patch 4, channels 4, embed 32.
    B, C, H, W = 2, 4, 16, 16
    P, E = 4, 32

    key = jax.random.PRNGKey(0)
    k_im, k_w, k_b = jax.random.split(key, 3)
    im = jax.random.normal(k_im, (B, C, H, W), dtype=jnp.float32)
    weight = jax.random.normal(k_w, (E, C, P, P), dtype=jnp.float32) * 0.02
    bias = jax.random.normal(k_b, (E,), dtype=jnp.float32) * 0.02

    # Default path: bf16 output (recommended — halves the dominant HBM write-back stream).
    out = patch_embedding_forward(im, weight, bias, P)
    jax.block_until_ready(out)

    # Pure-JAX strided-conv reference of the same forward (f32).
    ref = jax.lax.conv_general_dilated(
        im, weight, window_strides=(P, P), padding="VALID",
        dimension_numbers=("NCHW", "OIHW", "NCHW"),
    ) + bias.reshape(1, E, 1, 1)
    ref = ref.reshape(B, E, -1).transpose(0, 2, 1)   # flatten(2).transpose(1,2)

    assert out.shape == (B, (H // P) * (W // P), E)
    assert out.dtype == jnp.bfloat16
    # bf16 operands / bf16 output with f32 accumulation -> small, bounded deviation.
    assert jnp.allclose(out.astype(jnp.float32), ref, atol=2e-2, rtol=2e-2), \
        "mismatch vs conv reference (bf16 output path)"

    # f32-output path: matches the nn.Module's output dtype exactly.
    out_f32 = patch_embedding_forward(im, weight, bias, P, out_dtype=jnp.float32)
    jax.block_until_ready(out_f32)
    assert out_f32.dtype == jnp.float32
    assert jnp.allclose(out_f32, ref, atol=1e-2, rtol=1e-2), \
        "mismatch vs conv reference (f32 output path)"

    print("KERNEL_OK")
</pallas_src>

<mosaic_0001>
module attributes {stable_mosaic.version = 11 : i64} {
  func.func @_patch_embed_kernel(%arg0: i32, %arg1: i32, %arg2: memref<16x128xbf16, #tpu.memory_space<vmem>>, %arg3: memref<128x128xbf16, #tpu.memory_space<vmem>>, %arg4: memref<1x128xf32, #tpu.memory_space<vmem>>, %arg5: memref<16x128xbf16, #tpu.memory_space<vmem>>) attributes {dimension_semantics = [#tpu.dimension_semantics<parallel>, #tpu.dimension_semantics<parallel>], iteration_bounds = array<i64: 1, 2>, scalar_prefetch = 0 : i64, scratch_operands = 0 : i64, tpu.core_type = #tpu.core_type<tc>, window_params = [{transform_indices = @transform_0, window_bounds = array<i64: 16, 128>}, {transform_indices = @transform_1, window_bounds = array<i64: 128, 128>}, {transform_indices = @transform_2, window_bounds = array<i64: 1, 128>}, {transform_indices = @transform_3, window_bounds = array<i64: 16, 128>}]} {
    %c0 = arith.constant 0 : index
    %c0_0 = arith.constant 0 : index
    %0 = vector.load %arg2[%c0, %c0_0] : memref<16x128xbf16, #tpu.memory_space<vmem>>, vector<16x128xbf16>
    %c0_1 = arith.constant 0 : index
    %c0_2 = arith.constant 0 : index
    %1 = vector.load %arg3[%c0_1, %c0_2] : memref<128x128xbf16, #tpu.memory_space<vmem>>, vector<128x128xbf16>
    %cst = arith.constant dense<0.000000e+00> : vector<16x128xf32>
    %2 = tpu.matmul %0, %1, %cst {dimension_numbers = #tpu.dot_dimension_numbers<[1], [0], [0], [1], [0, 0, 1, 1], [], []>} : vector<16x128xbf16>, vector<128x128xbf16>, vector<16x128xf32> -> vector<16x128xf32>
    %c0_3 = arith.constant 0 : index
    %c0_4 = arith.constant 0 : index
    %3 = vector.load %arg4[%c0_3, %c0_4] : memref<1x128xf32, #tpu.memory_space<vmem>>, vector<1x128xf32>
    %4 = vector.broadcast %3 : vector<1x128xf32> to vector<16x128xf32>
    %5 = arith.addf %2, %4 : vector<16x128xf32>
    %6 = arith.truncf %5 : vector<16x128xf32> to vector<16x128xbf16>
    %c0_5 = arith.constant 0 : index
    %c0_6 = arith.constant 0 : index
    %7 = vector.load %arg5[%c0_5, %c0_6] : memref<16x128xbf16, #tpu.memory_space<vmem>>, vector<16x128xbf16>
    tpu.vector_store %arg5[%c0_5, %c0_6], %6 {strides = array<i32>} : memref<16x128xbf16, #tpu.memory_space<vmem>>, vector<16x128xbf16>,
    return
  }
  func.func @transform_0(%arg0: i32, %arg1: i32) -> (i32, i32) {
    %c0_i32 = arith.constant 0 : i32
    %c0_i32_0 = arith.constant 0 : i32
    return %arg1, %c0_i32 : i32, i32
  }
  func.func @transform_1(%arg0: i32, %arg1: i32) -> (i32, i32) {
    %c0_i32 = arith.constant 0 : i32
    %c0_i32_0 = arith.constant 0 : i32
    return %c0_i32, %arg0 : i32, i32
  }
  func.func @transform_2(%arg0: i32, %arg1: i32) -> (i32, i32) {
    %c0_i32 = arith.constant 0 : i32
    %c0_i32_0 = arith.constant 0 : i32
    return %c0_i32, %arg0 : i32, i32
  }
  func.func @transform_3(%arg0: i32, %arg1: i32) -> (i32, i32) {
    %c0_i32 = arith.constant 0 : i32
    return %arg1, %arg0 : i32, i32
  }
}

</mosaic_0001>

<bundles_post_ra>
// kernel: tpu_custom_call.1
= control target key start
LH: loop header
LB: loop body
LE: loop exit
PB: predicated region body
PF: predicated region fallthrough
CT: control target
= control target key end

     0   :  { %s942_s0 = inlined_call_operand.hbm [shape: bf16[32,128], index: 0, kind: input, shape index: {}]   ;;  %s943_s1 = inlined_call_operand.hbm [shape: bf16[128,128], index: 1, kind: input, shape index: {}]   ;;  %s944_s2 = inlined_call_operand.vmem [shape: f32[1,128], index: 2, kind: input, shape index: {}]   ;;  %s945_s3 = inlined_call_operand.hbm [shape: bf16[32,128], index: 3, kind: output, shape index: {}]  }
   0x1   :  { %947 = sst [smem:[#allocation11_spill]] %s943_s1 }
   0x2   :  { %8 = vsyncpa [#allocation3], 0 }
   0x3   :  { %10 = vsyncpa [#allocation3 + $0x1], 0 }
   0x4   :  { %11 = vsyncpa [#allocation6], 0 }
   0x5   :  { %12 = vsyncpa [#allocation4], 0 }
   0x6   :  { %14 = vsyncpa [#allocation4 + $0x1], 0  ;;  %s784_s12 = smov 0   ;;  %s786_s13 = smov 0  }
   0x7   :  { %s788_s14 = smov 0   ;;  %s790_s15 = smov 0  }
   0x8   :  { %s792_s16 = smov 0   ;;  %s794_s17 = smov 0  }
   0x9 LB: > { %s463_s18 = sadd.s32 4294967295, %s757_s17   ;;  %s464_s19 = sadd.s32 4294967294, %s757_s17   ;;  %s757_s17 = sphi %s794_s17, %s20_s17   ;;  %s753_s16 = sphi %s792_s16, %s961_s16   ;;  %s749_s15 = sphi %s790_s15, %s960_s15   ;;  %s745_s14 = sphi %s788_s14, %s959_s14   ;;  %s741_s13 = sphi %s786_s13, %s958_s13   ;;  %s737_s12 = sphi %s784_s12, %s957_s12  }
   0xa   : > { %p52_p0 = scmp.ne.s32.totalorder %s741_s13, %s737_s12  ;;  %p818_p1 = scmp.eq.s32.totalorder %s463_s18, 0 }
   0xb   : > { %p822_p2 = scmp.eq.s32.totalorder %s463_s18, 1  ;;  %p136_p3 = scmp.eq.s32.totalorder %s464_s19, 1 }
   0xc   : > { %p828_p4 = por %p818_p1, %p52_p0  ;;  %p465_p5 = scmp.ge.s32.totalorder %s757_s17, 1 }
   0xd   : > { %p833_p6 = por %p136_p3, %p52_p0  ;;  %p143_p7 = scmp.lt.s32.totalorder %s757_s17, 3 }
   0xe   : > { %s952_s1 = sld [smem:[#allocation11_spill]]  ;;  %s759_s28 = smov [#allocation5]  }
   0xf   : > { %p841_p8 = pnand %p465_p5, %p143_p7  ;;  %s158_s29 = sshll.u32 %s759_s28, 4  ;;  %s159_s29 = int_to_ptr.vmem [resolvable:$true] %s158_s29 }
  0x10   : > { %p468_p11 = scmp.ge.s32.totalorder %s757_s17, 2  ;;  %s946_s30 = smov 64  }
  0x11   : > { %p541_p9 = pneg %p841_p8  ;;  %s761_s4 = smov 4  }
  0x12   : > { %s29_s5 = sadd.s32 1, %s753_s16  ;;  %s39_s6 = sadd.s32 1, %s745_s14 }
  0x13   : > { %p542_p10 = pnand %p541_p9, %p818_p1  ;;  %p30_p12 = scmp.ge.s32.totalorder %s29_s5, 2 }
  0x14   : > { %s156_s26 = sshll.u32 %s952_s1, 4  ;;  %p46_p13 = scmp.ne.s32.totalorder %s745_s14, %s741_s13  ;;  %s157_s26 = int_to_ptr.hbm [resolvable:$true] %s156_s26 }
  0x15   : > { %544 = dma.hbm_to_vmem [thread:$0]  (!%p542_p10), %s157_s26, 1024, %s159_s29, [#allocation6], %s946_s30, %s946_s30, %s761_s4  }
  0x16   : > { %p47_p0 = scmp.eq.s32.totalorder %s757_s17, 0  ;;  %s963_s5 = smov (%p30_p12, %s29_s5), 0 }
  0x17   : > { %p866_p5 = por %p822_p2, %p46_p13  ;;  %s36_s9 = ssub.s32 %s753_s16, %s963_s5 }
  0x18   : > { %p860_p3 = por %p47_p0, %p46_p13  ;;  %p554_p7 = scmp.lt.s32.totalorder %s757_s17, 2 }
  0x19   : > { %p37_p9 = scmp.eq.s32.totalorder %s36_s9, 0  ;;  %s178_s10 = sand.u32 1, %s745_s14  }
  0x1a   : > { %s469_s11 = sshll.u32 %s178_s10, 3  ;;  %s517_s19 = sshll.u32 %s753_s16, 3 }
  0x1b   : > { %s875_s18 = scalar_select %p37_p9, %s745_s14, %s39_s6  }
  0x1c   : > { %s187_s26 = scalar_lea.hbm %s942_s0, %s517_s19  ;;  %s182_s28 = scalar_lea.vmem [#allocation2], %s469_s11 }
  0x1d   : > { %s190_s29 = sshll.u32 %s182_s28, 4  ;;  %s188_s21 = sshll.u32 %s187_s26, 4  ;;  %s191_s29 = int_to_ptr.vmem [resolvable:$true] %s190_s29  ;;  %s189_s21 = int_to_ptr.hbm [resolvable:$true] %s188_s21 }
  0x1e   : > { %p546_p2 = pnand %p554_p7, %p860_p3  ;;  %s179_s30 = scalar_lea.sflag [#allocation3], %s178_s10 }
  0x1f   : > { %s956_s1 = smov 64   ;;  %202 = sbr.rel (%p841_p8) target bundleno = 213 (0xd5), region = 32 }
  0x20   : > { %548 = dma.hbm_to_vmem [thread:$0]  (!%p546_p2), %s189_s21, 128, %s191_s29, %s179_s30, %s956_s1, %s956_s1, %s761_s4  }
  0x21   : > { %s889_s6 = sand.u32 (!%p841_p8), 1, %s741_s13  }
  0x22   : > { %s473_s9 = sshll.u32 (!%p841_p8), %s889_s6, 3  ;;  %s205_s11 = scalar_lea.sflag (!%p841_p8), [#allocation3], %s889_s6 }
  0x23   : > { %s208_s19 = scalar_lea.vmem (!%p841_p8), [#allocation2], %s473_s9 }
  0x24   : > { %724 = dma.done.wait (%p828_p4), %s205_s11, 128  }
  0x25   : > { %726 = vsyncadd (%p828_p4), %s205_s11, 4294967168 }
  0x26   : > { %728 = dma.done.wait (%p818_p1), [#allocation6], 1024  }
  0x27   : > { %730 = vsyncadd (%p818_p1), [#allocation6], 4294966272  ;;  %v526_v0 = vld [vmem:[#allocation5 + $0x38] sm:$0xff]  ;;  %v525_v1 = vld [vmem:[#allocation5 + $0x30] sm:$0xff]  ;;  %s527_s1 = sshll.u32 %s749_s15, 3  ;;  %s239_s7 = scalar_lea.vmem [#allocation7], %s473_s9 }
  0x28   : > { %321 = vmatpush.bf16.msra.mxu0 %v526_v0  ;;  %v524_v2 = vld [vmem:[#allocation5 + $0x28] sm:$0xff]  ;;  %v523_v3 = vld [vmem:[#allocation5 + $0x20] sm:$0xff]  ;;  %v522_v4 = vld [vmem:[#allocation5 + $0x18] sm:$0xff]  ;;  %s352_s27 = scalar_lea.hbm %s945_s3, %s527_s1  ;;  %s353_s10 = sshll.u32 %s239_s7, 4  ;;  %s354_s10 = int_to_ptr.vmem [resolvable:$true] %s353_s10 }
  0x29   : > { %v521_v5 = vld [vmem:[#allocation5 + $0x10] sm:$0xff]  ;;  %v520_v6 = vld [vmem:[#allocation5 + $0x8] sm:$0xff]  ;;  %v519_v7 = vld [vmem:[#allocation5] sm:$0xff]  ;;  %s355_s24 = sshll.u32 %s352_s27, 4  ;;  %s340_s15 = scalar_lea.sflag [#allocation4], %s889_s6  ;;  %s356_s24 = int_to_ptr.hbm [resolvable:$true] %s355_s24 }
  0x2a   : > { %v518_v8 = vld [vmem:[%s208_s19] sm:$0xff]  ;;  %s685_s25 = sshra.s32 %s356_s24, 4  ;;  %s691_s21 = scalar_lea.hbm %s945_s3, 16  ;;  %s686_s25 = int_to_ptr.hbm [resolvable:$true] %s685_s25 }
  0x2b   : > { %v610_v10 = vld [vmem:[%s944_s2] ss:$0 sm:$0xff]  ;;  %s687_s26 = scalar_lea.hbm %s686_s25, 8  ;;  %p692_p10 = scmp.lt.s32.totalorder %s686_s25, %s945_s3 }
  0x2c   : > { %322 = vmatpush.bf16.msra.mxu0 %v525_v1  ;;  %p688_p1 = scmp.ne.s32.totalorder %s686_s25, %s687_s26  ;;  %p693_p12 = scmp.lt.s32.totalorder %s691_s21, %s687_s26 }
  0x2e   : > { %p689_p4 = pnand %p688_p1, %p866_p5  ;;  %p694_p13 = por %p693_p12, %p692_p10 }
  0x30   : > { %323 = vmatpush.bf16.msra.mxu0 %v524_v2  ;;  %p690_p8 = pneg %p689_p4 }
  0x32   : > { %p695_p0 = pnand %p694_p13, %p690_p8 }
  0x34   : > { %324 = vmatpush.bf16.msra.mxu0 %v523_v3 }
  0x38   : > { %325 = vmatpush.bf16.msra.mxu0 %v522_v4 }
  0x3c   : > { %326 = vmatpush.bf16.msra.mxu0 %v521_v5 }
  0x40   : > { %327 = vmatpush.bf16.msra.mxu0 %v520_v6 }
  0x44   : > { %328 = vmatpush.bf16.msra.mxu0 %v519_v7 }
  0x47   : > { %329 = vmatmul.bf16.vlgmr.msra.gmra.mxu0 %v518_v8 }
  0xc4   : > { %v330_v9 = vpop.f32.mrf.mxu0 }
  0xc5   : > { %v331_v12 = vadd.f32 %v610_v10, %v330_v9 }
  0xcc   : > { %v332_v11 = vpop.f32.mrf.mxu0 }
  0xcd   : > { %v333_v13 = vadd.f32 %v610_v10, %v332_v11 }
  0xcf   : > { %v531_v14 = vpack.c.bf16 %v333_v13, %v331_v12 }
  0xd1   : > { %532 = vst [vmem:[%s239_s7] sm:$0xff] %v531_v14  }
  0xd2   : > { %698 = shalt.err (!%p695_p0)
}
  0xd3   : > { %s762_s6 = smov 64   ;;  %s763_s19 = smov 4  }
  0xd4   : > { %539 = dma.vmem_to_hbm [thread:$0]  (%p866_p5), %s354_s10, 128, %s356_s24, %s340_s15, %s762_s6, %s762_s6, %s763_s19  }
  0xd5 PF: > { %s370_s1 = sand.u32 1, %s737_s12   ;;  %p550_p3 = pnand %p468_p11, %p833_p6 }
  0xd6   : > { %s371_s20 = scalar_lea.sflag [#allocation4], %s370_s1 }
  0xd7   : > { %p551_p7 = pneg %p550_p3 }
  0xd9   : > { %732 = dma.done.wait (%p551_p7), %s371_s20, 128  }
  0xda   : > { %734 = vsyncadd (%p551_p7), %s371_s20, 4294967168  ;;  %s20_s17 = sadd.s32 1, %s757_s17   ;;  %s957_s12 = smov %s741_s13 }
  0xdb   : > { %p17_p9 = scmp.ge.s32.totalorder %s20_s17, 4   ;;  %s958_s13 = smov %s745_s14 }
  0xdc   : > { %s959_s14 = smov %s875_s18  ;;  %s960_s15 = smov %s753_s16 }
  0xdd   : > { %s961_s16 = smov %s963_s5  ;;  %19 = sbr.rel (!%p17_p9) target bundleno = 9 (0x9), region = 85 }
  0xe2   :  { %377 = vsyncpa [#allocation3], 1 }
  0xe3   :  { %379 = vsyncpa [#allocation3 + $0x1], 1 }
  0xe4   :  { %380 = vsyncpa [#allocation6], 1 }
  0xe5   :  { %381 = vsyncpa [#allocation4], 1 }
  0xe6   :  { %383 = vsyncpa [#allocation4 + $0x1], 1 }

</bundles_post_ra>
